<compile_context>
chip_gen: v7x
topology: tpu7x:2x2x1
jax: 0.10.0
libtpu: 0.0.40
codegen_flags: <defaults>
</compile_context>

<pallas_src>
import jax
import jax.numpy as jnp
from jax.experimental import pallas as pl
from jax.experimental.pallas import tpu as pltpu


def _linear_kernel_single_k(compute_dtype):
    """logits tile = x_tile @ w_tile, full K resident (no accumulator needed)."""
    def kernel(x_ref, w_ref, o_ref):
        x = x_ref[...]                     # (tm, K)
        w = w_ref[...]                     # (K, tn)  -- pre-transposed layout
        if compute_dtype is not None:
            x = x.astype(compute_dtype)
            w = w.astype(compute_dtype)
        o_ref[...] = jnp.dot(
            x, w, preferred_element_type=jnp.float32
        ).astype(o_ref.dtype)
    return kernel


def _linear_kernel_k_tiled(compute_dtype):
    """K-tiled variant: f32 VMEM accumulator with pl.when init/finalize."""
    def kernel(x_ref, w_ref, o_ref, acc_ref):
        @pl.when(pl.program_id(2) == 0)
        def _():
            acc_ref[...] = jnp.zeros_like(acc_ref)

        x = x_ref[...]                     # (tm, tk)
        w = w_ref[...]                     # (tk, tn)
        if compute_dtype is not None:
            x = x.astype(compute_dtype)
            w = w.astype(compute_dtype)
        acc_ref[...] += jnp.dot(x, w, preferred_element_type=jnp.float32)

        @pl.when(pl.program_id(2) == pl.num_programs(2) - 1)
        def _():
            o_ref[...] = acc_ref[...].astype(o_ref.dtype)
    return kernel


def softmax_layer_forward(
    x,
    weight,
    *,
    weight_is_transposed=False,
    tm=None,
    tn=None,
    tk=None,
    compute_dtype=None,
    force_pallas=None,
):
    """SoftmaxLayer.forward: logits = x @ weight.T, returns (logits, logits).

    x:      (batch, in_nodes)
    weight: (n_class, in_nodes) PyTorch nn.Linear layout, or (in_nodes, n_class)
            if weight_is_transposed=True (preferred parameter storage layout).
    """
    B, K = x.shape
    if weight_is_transposed:
        K2, N = weight.shape
        w_t = weight
    else:
        N, K2 = weight.shape
        # One-time transpose to the MXU-friendly (K, N) layout; in production
        # the parameter should simply be stored this way.
        w_t = jnp.transpose(weight)
    assert K == K2, f"in_nodes mismatch: x has {K}, weight has {K2}"

    # Toy-shape dispatch: below a few MFLOPs the standalone pallas_call is pure
    # launch/DMA overhead; let XLA fuse a plain dot instead.
    use_pallas = force_pallas
    if use_pallas is None:
        use_pallas = (2 * B * K * N) >= (1 << 22)
    if not use_pallas:
        logits = jnp.dot(x, w_t, preferred_element_type=jnp.float32).astype(x.dtype)
        return logits, logits

    # ---- Tile selection -------------------------------------------------
    # tm capped at 256 (v7x VMEM budget); tn=256 matches the 2x256^2 MXU on
    # v6e/v7x and is a multiple of 128 for v5e.  K is only tiled when a clean
    # divisor exists (padded-K blocks would corrupt the reduction otherwise).
    if tm is None:
        tm = B if B <= 256 else 256
    if tn is None:
        tn = N if N <= 256 else 256
    if tk is None:
        if K <= 512:
            tk = K
        else:
            tk = next((t for t in (512, 256, 128) if K % t == 0), K)

    nb = pl.cdiv(N, tn)
    mb = pl.cdiv(B, tm)
    kb = pl.cdiv(K, tk)

    cost = pl.CostEstimate(
        flops=2 * B * K * N,
        transcendentals=0,
        bytes_accessed=(B * K * x.dtype.itemsize
                        + K * N * w_t.dtype.itemsize
                        + B * N * x.dtype.itemsize),
    )

    if kb == 1:
        # No reduction axis: write output tile directly, no scratch.
        grid = (nb, mb)
        grid_spec = pltpu.PrefetchScalarGridSpec(
            num_scalar_prefetch=0,
            grid=grid,
            in_specs=[
                pl.BlockSpec((tm, K), lambda n, m: (m, 0)),   # x rows
                pl.BlockSpec((K, tn), lambda n, m: (0, n)),   # weight column slab
            ],
            out_specs=pl.BlockSpec((tm, tn), lambda n, m: (m, n)),
        )
        kernel = _linear_kernel_single_k(compute_dtype)
        dims = ("parallel", "parallel")
    else:
        grid = (nb, mb, kb)
        grid_spec = pltpu.PrefetchScalarGridSpec(
            num_scalar_prefetch=0,
            grid=grid,
            in_specs=[
                pl.BlockSpec((tm, tk), lambda n, m, k: (m, k)),
                pl.BlockSpec((tk, tn), lambda n, m, k: (k, n)),
            ],
            out_specs=pl.BlockSpec((tm, tn), lambda n, m, k: (m, n)),
            scratch_shapes=[pltpu.VMEM((tm, tn), jnp.float32)],
        )
        kernel = _linear_kernel_k_tiled(compute_dtype)
        dims = ("parallel", "parallel", "arbitrary")

    logits = pl.pallas_call(
        kernel,
        out_shape=jax.ShapeDtypeStruct((B, N), x.dtype),
        grid_spec=grid_spec,
        compiler_params=pltpu.CompilerParams(dimension_semantics=dims),
        cost_estimate=cost,
    )(x, w_t)

    # PyTorch module returns the same tensor twice.
    return logits, logits


if __name__ == "__main__":
    key = jax.random.PRNGKey(0)

    def make_inputs(k, batch, in_nodes, n_class):
        kx, kw = jax.random.split(k)
        xx = jax.random.normal(kx, (batch, in_nodes), dtype=jnp.float32)
        bound = 1.0 / (in_nodes ** 0.5)   # nn.Linear default init range
        ww = jax.random.uniform(
            kw, (n_class, in_nodes), dtype=jnp.float32, minval=-bound, maxval=bound
        )
        return xx, ww

    k0, k1, k2 = jax.random.split(key, 3)

    # Case A: exercises N tiling + K-axis accumulator (grid=(3, 1, 2)).
    xa, wa = make_inputs(k0, batch=16, in_nodes=1024, n_class=768)
    la, la2 = softmax_layer_forward(xa, wa, force_pallas=True)
    jax.block_until_ready((la, la2))
    refa = xa @ wa.T
    assert la.shape == (16, 768) and la2.shape == (16, 768)
    assert jnp.allclose(la, refa, atol=1e-4, rtol=1e-4)
    assert jnp.allclose(la2, refa, atol=1e-4, rtol=1e-4)

    # Case B: single-K-block kernel at module-like small shape (grid=(2, 1)).
    xb, wb = make_inputs(k1, batch=8, in_nodes=256, n_class=512)
    lb, lb2 = softmax_layer_forward(xb, wb, force_pallas=True)
    jax.block_until_ready((lb, lb2))
    refb = xb @ wb.T
    assert jnp.allclose(lb, refb, atol=1e-4, rtol=1e-4)
    assert jnp.allclose(lb2, refb, atol=1e-4, rtol=1e-4)

    # Case C: toy shape auto-dispatches to plain jnp.dot (launch-bound regime).
    xc, wc = make_inputs(k2, batch=4, in_nodes=32, n_class=256)
    lc, lc2 = softmax_layer_forward(xc, wc)
    jax.block_until_ready((lc, lc2))
    refc = xc @ wc.T
    assert jnp.allclose(lc, refc, atol=1e-5, rtol=1e-5)
    assert jnp.allclose(lc2, refc, atol=1e-5, rtol=1e-5)

    print("KERNEL_OK")
</pallas_src>

<mosaic_0001>
module attributes {stable_mosaic.version = 11 : i64} {
  func.func @kernel(%arg0: i32, %arg1: i32, %arg2: i32, %arg3: memref<16x512xf32, #tpu.memory_space<vmem>>, %arg4: memref<512x256xf32, #tpu.memory_space<vmem>>, %arg5: memref<16x256xf32, #tpu.memory_space<vmem>>, %arg6: memref<16x256xf32, #tpu.memory_space<vmem>>) attributes {dimension_semantics = [#tpu.dimension_semantics<parallel>, #tpu.dimension_semantics<parallel>, #tpu.dimension_semantics<arbitrary>], iteration_bounds = array<i64: 3, 1, 2>, scalar_prefetch = 0 : i64, scratch_operands = 1 : i64, tpu.core_type = #tpu.core_type<tc>, window_params = [{transform_indices = @transform_0, window_bounds = array<i64: 16, 512>}, {transform_indices = @transform_1, window_bounds = array<i64: 512, 256>}, {transform_indices = @transform_2, window_bounds = array<i64: 16, 256>}]} {
    %c0_i32 = arith.constant 0 : i32
    %0 = arith.cmpi eq, %arg2, %c0_i32 : i32
    %1 = arith.extui %0 : i1 to i32
    %c0_i32_0 = arith.constant 0 : i32
    %2 = arith.cmpi ne, %1, %c0_i32_0 : i32
    scf.if %2 {
      %cst_9 = arith.constant 0.000000e+00 : f32
      %12 = vector.broadcast %cst_9 : f32 to vector<16x256xf32>
      %c0_10 = arith.constant 0 : index
      %c0_11 = arith.constant 0 : index
      %13 = vector.load %arg6[%c0_10, %c0_11] : memref<16x256xf32, #tpu.memory_space<vmem>>, vector<16x256xf32>
      tpu.vector_store %arg6[%c0_10, %c0_11], %12 {strides = array<i32>} : memref<16x256xf32, #tpu.memory_space<vmem>>, vector<16x256xf32>,
    } else {
    }
    %c0 = arith.constant 0 : index
    %c0_1 = arith.constant 0 : index
    %3 = vector.load %arg3[%c0, %c0_1] : memref<16x512xf32, #tpu.memory_space<vmem>>, vector<16x512xf32>
    %c0_2 = arith.constant 0 : index
    %c0_3 = arith.constant 0 : index
    %4 = vector.load %arg4[%c0_2, %c0_3] : memref<512x256xf32, #tpu.memory_space<vmem>>, vector<512x256xf32>
    %c0_4 = arith.constant 0 : index
    %c0_5 = arith.constant 0 : index
    %5 = vector.load %arg6[%c0_4, %c0_5] : memref<16x256xf32, #tpu.memory_space<vmem>>, vector<16x256xf32>
    %cst = arith.constant dense<0.000000e+00> : vector<16x256xf32>
    %6 = tpu.matmul %3, %4, %cst {dimension_numbers = #tpu.dot_dimension_numbers<[1], [0], [0], [1], [0, 0, 1, 1], [], []>} : vector<16x512xf32>, vector<512x256xf32>, vector<16x256xf32> -> vector<16x256xf32>
    %7 = arith.addf %5, %6 : vector<16x256xf32>
    %c0_6 = arith.constant 0 : index
    %c0_7 = arith.constant 0 : index
    %8 = vector.load %arg6[%c0_6, %c0_7] : memref<16x256xf32, #tpu.memory_space<vmem>>, vector<16x256xf32>
    tpu.vector_store %arg6[%c0_6, %c0_7], %7 {strides = array<i32>} : memref<16x256xf32, #tpu.memory_space<vmem>>, vector<16x256xf32>,
    %c1_i32 = arith.constant 1 : i32
    %9 = arith.cmpi eq, %arg2, %c1_i32 : i32
    %10 = arith.extui %9 : i1 to i32
    %c0_i32_8 = arith.constant 0 : i32
    %11 = arith.cmpi ne, %10, %c0_i32_8 : i32
    scf.if %11 {
      %c0_9 = arith.constant 0 : index
      %c0_10 = arith.constant 0 : index
      %12 = vector.load %arg6[%c0_9, %c0_10] : memref<16x256xf32, #tpu.memory_space<vmem>>, vector<16x256xf32>
      %c0_11 = arith.constant 0 : index
      %c0_12 = arith.constant 0 : index
      %13 = vector.load %arg5[%c0_11, %c0_12] : memref<16x256xf32, #tpu.memory_space<vmem>>, vector<16x256xf32>
      tpu.vector_store %arg5[%c0_11, %c0_12], %12 {strides = array<i32>} : memref<16x256xf32, #tpu.memory_space<vmem>>, vector<16x256xf32>,
    } else {
    }
    return
  }
  func.func @transform_0(%arg0: i32, %arg1: i32, %arg2: i32) -> (i32, i32) {
    %c0_i32 = arith.constant 0 : i32
    return %arg1, %arg2 : i32, i32
  }
  func.func @transform_1(%arg0: i32, %arg1: i32, %arg2: i32) -> (i32, i32) {
    %c0_i32 = arith.constant 0 : i32
    return %arg2, %arg0 : i32, i32
  }
  func.func @transform_2(%arg0: i32, %arg1: i32, %arg2: i32) -> (i32, i32) {
    %c0_i32 = arith.constant 0 : i32
    return %arg1, %arg0 : i32, i32
  }
}

</mosaic_0001>

<bundles_post_ra>
// kernel: tpu_custom_call.1
= control target key start
LH: loop header
LB: loop body
LE: loop exit
PB: predicated region body
PF: predicated region fallthrough
CT: control target
= control target key end

     0   :  { %s1743_s0 = inlined_call_operand.hbm [shape: f32[16,1024], index: 0, kind: input, shape index: {}]   ;;  %s1744_s1 = inlined_call_operand.hbm [shape: f32[1024,768], index: 1, kind: input, shape index: {}]   ;;  %s1745_s2 = inlined_call_operand.hbm [shape: f32[16,768], index: 2, kind: output, shape index: {}]  }
   0x1   :  { %1756 = sst [smem:[#allocation17_spill]] %s1743_s0 }
   0x2   :  { %1757 = sst [smem:[#allocation18_spill]] %s1745_s2 }
   0x3   :  { %7 = vsyncpa [#allocation4], 0 }
   0x4   :  { %9 = vsyncpa [#allocation4 + $0x1], 0 }
   0x5   :  { %10 = vsyncpa [#allocation7], 0 }
   0x6   :  { %12 = vsyncpa [#allocation7 + $0x1], 0 }
   0x7   :  { %13 = vsyncpa [#allocation5], 0 }
   0x8   :  { %15 = vsyncpa [#allocation5 + $0x1], 0  ;;  %s1236_s9 = smov 0   ;;  %s1238_s10 = smov 0  }
   0x9   :  { %s1240_s11 = smov 0   ;;  %s1242_s12 = smov 0  }
   0xa   :  { %s1244_s13 = smov 0   ;;  %s1246_s14 = smov 0  }
   0xb   :  { %s1248_s15 = smov 0   ;;  %s1250_s16 = smov 0  }
   0xc   :  { %s1252_s17 = smov 0   ;;  %s1254_s18 = smov 0  }
   0xd   :  { %s1256_s19 = smov 0   ;;  %s1258_s20 = smov 0  }
   0xe   :  { %s1260_s21 = smov 0   ;;  %s1262_s22 = smov 0  }
   0xf LB: > { %1758 = sst [smem:[#allocation12_spill]] %s1186_s17  ;;  %s697_s23 = sadd.s32 4294967295, %s1206_s22   ;;  %s1206_s22 = sphi %s1262_s22, %s21_s22   ;;  %s1202_s21 = sphi %s1260_s21, %s1803_s21   ;;  %s1198_s20 = sphi %s1258_s20, %s1802_s20   ;;  %s1194_s19 = sphi %s1256_s19, %s1801_s19   ;;  %s1190_s18 = sphi %s1254_s18, %s1800_s18   ;;  %s1186_s17 = sphi %s1252_s17, %s1788_s17   ;;  %s1182_s16 = sphi %s1250_s16, %s1799_s16   ;;  %s1178_s15 = sphi %s1248_s15, %s1798_s15   ;;  %s1174_s14 = sphi %s1246_s14, %s1797_s14   ;;  %s1170_s13 = sphi %s1244_s13, %s1796_s13   ;;  %s1166_s12 = sphi %s1242_s12, %s1795_s12   ;;  %s1162_s11 = sphi %s1240_s11, %s1794_s11   ;;  %s1158_s10 = sphi %s1238_s10, %s1793_s10   ;;  %s1154_s9 = sphi %s1236_s9, %s1792_s9  }
  0x10   : > { %s33_s24 = sadd.s32 1, %s1198_s20  ;;  %s49_s26 = sadd.s32 1, %s1186_s17 }
  0x11   : > { %p1306_p0 = scmp.ge.s32.totalorder %s33_s24, 2  ;;  %p56_p1 = scmp.ne.s32.totalorder %s1186_s17, %s1182_s16 }
  0x12   : > { %p1749_p2 = scmp.eq.s32.totalorder %s1206_s22, 0  ;;  %p62_p4 = scmp.ne.s32.totalorder %s1182_s16, %s1178_s15 }
  0x13   : > { %s1805_s24 = smov (%p1306_p0, %s33_s24), 0  ;;  %p1329_p5 = scmp.eq.s32.totalorder %s697_s23, 0 }
  0x14   : > { %1760 = sst [smem:[#allocation13_spill]] %s1805_s24  ;;  %p1320_p3 = por %p1749_p2, %p56_p1 }
  0x15   : > { %s1327_s28 = ssub.s32 %s1198_s20, %s1805_s24  ;;  %p1334_p7 = scmp.eq.s32.totalorder %s697_s23, 5 }
  0x16   : > { %s1762_s29 = scalar_select %p1329_p5, 1, 0 }
  0x17   : > { %p47_p6 = scmp.eq.s32.totalorder %s1327_s28, 0  ;;  %p1340_p8 = por %p1329_p5, %p62_p4 }
  0x18   : > { %s1763_s30 = scalar_select %p1334_p7, 1, 0 }
  0x19   : > { %s1764_s3 = scalar_select %p1340_p8, 1, 0 }
  0x1a   : > { %s1345_s4 = scalar_select %p47_p6, %s1186_s17, %s49_s26  }
  0x1b   : > { %p1748_p9 = scmp.lt.s32.totalorder %s1206_s22, 6  ;;  %s142_s5 = sand.u32 1, %s1186_s17  }
  0x1c   : > { %1765 = sst [smem:[#allocation14_spill]] %s1345_s4  ;;  %s701_s6 = sshll.u32 %s142_s5, 6 }
  0x1d   : > { %s720_s7 = sshll.u32 %s1198_s20, 9  ;;  %s1766_s0 = sld [smem:[#allocation17_spill]] }
  0x1e   : > { %s146_s23 = scalar_lea.vmem [#allocation3], %s701_s6  ;;  %p1361_p10 = pnand %p1748_p9, %p1320_p3 }
  0x1f   : > { %s156_s2 = sshll.u32 %s146_s23, 4  ;;  %s1365_s4 = scalar_lea.sflag [#allocation4], %s142_s5  ;;  %s1355_s2 = int_to_ptr.vmem [resolvable:$true] %s156_s2 }
  0x20   : > { %p998_p12 = pneg %p1361_p10 }
  0x23   : > { %s1353_s24 = scalar_lea.hbm %s1766_s0, %s720_s7  ;;  %s1001_s27 = scalar_lea.hbm %s1766_s0, 2048 }
  0x24   : > { %s996_s7 = scalar_lea.hbm %s1353_s24, 1024  ;;  %p1002_p3 = scmp.lt.u32.totalorder %s1353_s24, %s1766_s0 }
  0x25   : > { %p997_p11 = scmp.ne.s32.totalorder %s1353_s24, %s996_s7  ;;  %p1003_p4 = scmp.lt.u32.totalorder %s1001_s27, %s996_s7 }
  0x26   : > { %p1005_p9 = scmp.lt.u32.totalorder %s996_s7, %s1353_s24 }
  0x27   : > { %p999_p13 = pnand %p998_p12, %p997_p11  ;;  %p1004_p6 = por %p1003_p4, %p1002_p3 }
  0x29   : > { %p1000_p1 = pneg %p999_p13  ;;  %p1006_p2 = por %p1005_p9, %p1004_p6 }
  0x2b   : > { %p1007_p8 = pnand %p1006_p2, %p1000_p1 }
  0x2d   : > { %1010 = shalt.err (!%p1007_p8)
}
  0x2e   : > { %s1011_s5 = scalar_lea.vmem %s1355_s2, 1024  ;;  %s1208_s6 = smov [#allocation3]  }
  0x2f   : > { %p1012_p11 = scmp.ne.s32.totalorder %s1355_s2, %s1011_s5  ;;  %s1016_s8 = sshll.u32 %s1208_s6, 4  ;;  %s1017_s8 = int_to_ptr.vmem [resolvable:$false] %s1016_s8 }
  0x30   : > { %s1018_s15 = scalar_lea.vmem %s1017_s8, 2048  ;;  %p1019_p5 = scmp.lt.s32.totalorder %s1355_s2, %s1017_s8 }
  0x31   : > { %p1014_p13 = pnand %p1012_p11, %p998_p12  ;;  %p1020_p3 = scmp.lt.s32.totalorder %s1018_s15, %s1011_s5 }
  0x33   : > { %p1015_p7 = pneg %p1014_p13  ;;  %p1021_p4 = por %p1020_p3, %p1019_p5 }
  0x35   : > { %p1022_p9 = pnand %p1021_p4, %p1015_p7 }
  0x37   : > { %1025 = shalt.err (!%p1022_p9)
}
  0x38   : > { %s1209_s7 = smov 1024   ;;  %s1210_s27 = smov 512  }
  0x39   : > { %s1211_s23 = smov 32   ;;  %p709_p2 = scmp.ge.s32.totalorder %s1206_s22, 1 }
  0x3a   : > { %864 = dma.hbm_to_vmem [thread:$0]  (!%p1361_p10), %s1353_s24, 1024, %s1355_s2, %s1365_s4, %s1209_s7, %s1210_s27, %s1211_s23  }
  0x3b   : > { %p188_p5 = scmp.lt.s32.totalorder %s1206_s22, 7  ;;  %s698_s6 = sadd.s32 4294967294, %s1206_s22  }
  0x3c   : > { %s40_s8 = sadd.s32 1, %s1202_s21  ;;  %s77_s15 = sadd.s32 1, %s1174_s14 }
  0x3d   : > { %p1395_p7 = pnand %p709_p2, %p188_p5  ;;  %s1807_s8 = smov (!%p1306_p0, %s40_s8), %s1202_s21 }
  0x3e   : > { %p84_p8 = scmp.ne.s32.totalorder %s1174_s14, %s1170_s13  ;;  %p90_p10 = scmp.ne.s32.totalorder %s1170_s13, %s1166_s12 }
  0x3f   : > { %p42_p12 = scmp.ge.s32.totalorder %s1807_s8, 3  ;;  %s105_s2 = sadd.s32 1, %s1162_s11 }
  0x40   : > { %p1769_p1 = scmp.eq.s32.totalorder %s1206_s22, 0  ;;  %p1771_p11 = scmp.ne.s32.totalorder %s1762_s29, 0 }
  0x41   : > { %s1809_s8 = smov (%p42_p12, %s1807_s8), 0  ;;  %p115_p0 = scmp.ne.s32.totalorder %s1162_s11, %s1158_s10 }
  0x42   : > { %p1412_p6 = por %p84_p8, %p1769_p1  ;;  %p1418_p13 = por %p90_p10, %p1771_p11 }
  0x43   : > { %1773 = sst [smem:[#allocation15_spill]] %s1809_s8  ;;  %p121_p3 = scmp.ne.s32.totalorder %s1158_s10, %s1154_s9 }
  0x44   : > { %s1772_s4 = scalar_select %p1418_p13, 1, 0 }
  0x45   : > { %s73_s12 = ssub.s32 %s1202_s21, %s1809_s8  ;;  %p122_p4 = scmp.eq.s32.totalorder %s698_s6, 5 }
  0x46   : > { %s74_s25 = sor.u32 %s73_s12, %s1327_s28  ;;  %p103_p9 = scmp.eq.s32.totalorder %s73_s12, 0 }
  0x47   : > { %p75_p2 = scmp.eq.s32.totalorder %s74_s25, 0  ;;  %p1774_p5 = scmp.ne.s32.totalorder %s1763_s30, 0 }
  0x48   : > { %s1438_s26 = scalar_select %p103_p9, %s1162_s11, %s105_s2  }
  0x49   : > { %p1433_p8 = por %p1774_p5, %p115_p0  ;;  %p1443_p10 = por %p122_p4, %p121_p3 }
  0x4a   : > { %s1441_s7 = scalar_select %p75_p2, %s1174_s14, %s77_s15  }
  0x4b   : > { %s1775_s29 = scalar_select %p1433_p8, 1, 0 }
  0x4c   : > { %1776 = sst [smem:[#allocation16_spill]] %s1441_s7  ;;  %s166_s23 = sand.u32 1, %s1174_s14  }
  0x4d   : > { %s1777_s27 = scalar_select %p1443_p10, 1, 0 }
  0x4e   : > { %s704_s0 = sshll.u32 %s166_s23, 10  ;;  %s706_s8 = sshll.u32 %s1202_s21, 1 }
  0x4f   : > { %s854_s6 = smul.u32 384, %s1198_s20  ;;  %s170_s28 = scalar_lea.vmem [#allocation6], %s704_s0 }
  0x50   : > { %s180_s12 = sshll.u32 %s170_s28, 4  ;;  %p1778_p12 = scmp.lt.s32.totalorder %s1206_s22, 6  ;;  %s1450_s12 = int_to_ptr.vmem [resolvable:$true] %s180_s12 }
  0x51   : > { %s177_s15 = sadd.s32 %s854_s6, %s706_s8  ;;  %s1465_s0 = scalar_lea.sflag [#allocation7], %s166_s23 }
  0x52   : > { %p1456_p1 = pnand %p1778_p12, %p1412_p6  ;;  %s708_s2 = sshll.u32 %s177_s15, 7 }
  0x53   : > { %s1463_s7 = scalar_lea.hbm %s1744_s1, %s708_s2  ;;  %s1031_s17 = scalar_lea.hbm %s1744_s1, 98304 }
  0x54   : > { %s1026_s24 = scalar_lea.hbm %s1463_s7, 16384  ;;  %p1028_p11 = pneg %p1456_p1 }
  0x55   : > { %p1027_p6 = scmp.ne.s32.totalorder %s1463_s7, %s1026_s24  ;;  %p1032_p4 = scmp.lt.u32.totalorder %s1463_s7, %s1744_s1 }
  0x56   : > { %p1033_p9 = scmp.lt.u32.totalorder %s1031_s17, %s1026_s24  ;;  %p1035_p5 = scmp.lt.u32.totalorder %s1026_s24, %s1463_s7 }
  0x57   : > { %p1029_p0 = pnand %p1028_p11, %p1027_p6 }
  0x58   : > { %p1034_p2 = por %p1033_p9, %p1032_p4 }
  0x59   : > { %p1030_p3 = pneg %p1029_p0 }
  0x5a   : > { %p1036_p12 = por %p1035_p5, %p1034_p2 }
  0x5c   : > { %p1037_p10 = pnand %p1036_p12, %p1030_p3 }
  0x5e   : > { %1040 = shalt.err (!%p1037_p10)
}
  0x5f   : > { %s1041_s23 = scalar_lea.vmem %s1450_s12, 16384  ;;  %s1212_s2 = smov [#allocation6]  }
  0x60   : > { %p1042_p6 = scmp.ne.s32.totalorder %s1450_s12, %s1041_s23  ;;  %s1046_s25 = sshll.u32 %s1212_s2, 4  ;;  %s1047_s25 = int_to_ptr.vmem [resolvable:$false] %s1046_s25 }
  0x61   : > { %s1048_s8 = scalar_lea.vmem %s1047_s25, 32768  ;;  %p1049_p13 = scmp.lt.s32.totalorder %s1450_s12, %s1047_s25 }
  0x62   : > { %p1044_p0 = pnand %p1042_p6, %p1028_p11  ;;  %p1050_p4 = scmp.lt.s32.totalorder %s1048_s8, %s1041_s23 }
  0x64   : > { %p1045_p8 = pneg %p1044_p0  ;;  %p1051_p9 = por %p1050_p4, %p1049_p13 }
  0x66   : > { %p1052_p2 = pnand %p1051_p9, %p1045_p8 }
  0x68   : > { %1055 = shalt.err (!%p1052_p2)
}
  0x69   : > { %s1213_s24 = smov 768   ;;  %s1214_s6 = smov 256  }
  0x6a   : > { %s1215_s17 = smov 16   ;;  %192 = sbr.rel (%p1395_p7) target bundleno = 453 (0x1c5), region = 28 }
  0x6b   : > { %867 = dma.hbm_to_vmem [thread:$0]  (!%p1456_p1), %s1463_s7, 16384, %s1450_s12, %s1465_s0, %s1213_s24, %s1214_s6, %s1215_s17  }
  0x6c   : > { %s194_s28 = sand.u32 (!%p1395_p7), 1, %s1182_s16   ;;  %p1780_p13 = scmp.ne.s32.totalorder (!%p1395_p7), %s1764_s3, 0 }
  0x6d   : > { %s710_s15 = sshll.u32 (!%p1395_p7), %s194_s28, 6  ;;  %s195_s23 = scalar_lea.sflag (!%p1395_p7), [#allocation4], %s194_s28 }
  0x6e   : > { %s1496_s2 = scalar_lea.vmem (!%p1395_p7), [#allocation3], %s710_s15 }
  0x71   : > { %1141 = dma.done.wait (%p1780_p13), %s195_s23, 1024  }
  0x72   : > { %1143 = vsyncadd (%p1780_p13), %s195_s23, 4294966272  ;;  %s203_s25 = sand.u32 1, %s1170_s13   ;;  %p1781_p7 = scmp.ne.s32.totalorder %s1772_s4, 0 }
  0x73   : > { %s711_s30 = sshll.u32 %s203_s25, 10  ;;  %s204_s7 = scalar_lea.sflag [#allocation7], %s203_s25 }
  0x74   : > { %s1503_s12 = scalar_lea.vmem [#allocation6], %s711_s30 }
  0x75   : > { %1145 = dma.done.wait (%p1781_p7), %s204_s7, 16384  }
  0x76   : > { %1147 = vsyncadd (%p1781_p7), %s204_s7, 4294950912  ;;  %s230_s5 = sand.u32 1, %s1158_s10   ;;  %p713_p8 = scmp.ne.s32.totalorder %s1190_s18, 0 }
  0x77   : > { %s712_s0 = sshll.u32 %s230_s5, 5  ;;  %v1216_v0 = vmov (!%p713_p8), 0.0  }
  0x78   : > { %s1512_s8 = scalar_lea.vmem [#allocation8], %s712_s0  ;;  %242 = sbr.rel (%p713_p8) target bundleno = 127 (0x7f), region = 40  ;;  %243 = vst [vmem:[#allocation2] sm:$0xff] (!%p713_p8), %v1216_v0  ;;  %244 = vst [vmem:[#allocation2 + $0x8] sm:$0xff] (!%p713_p8), %v1216_v0 }
  0x79   : > { %245 = vst [vmem:[#allocation2 + $0x10] sm:$0xff] (!%p713_p8), %v1216_v0  ;;  %246 = vst [vmem:[#allocation2 + $0x18] sm:$0xff] (!%p713_p8), %v1216_v0 }
  0x7f PF: > { %v256_v1 = vld [vmem:[%s1503_s12 + $0x8] sm:$0xff]  ;;  %v258_v2 = vld [vmem:[%s1503_s12 + $0x18] sm:$0xff]  ;;  %v255_v6 = vld [vmem:[%s1503_s12] sm:$0xff]  ;;  %p714_p10 = scmp.ne.s32.totalorder %s1190_s18, 1 }
  0x80   : > { %v320_v3 = vld [vmem:[%s1503_s12 + $0x208] sm:$0xff]  ;;  %v722_v4 = vpack.c.bf16 %v258_v2, %v256_v1  ;;  %v322_v5 = vld [vmem:[%s1503_s12 + $0x218] sm:$0xff]  ;;  %v257_v7 = vld [vmem:[%s1503_s12 + $0x10] sm:$0xff] }
  0x81   : > { %v786_v8 = vpack.c.bf16 %v322_v5, %v320_v3  ;;  %v724_v9 = vpack.c.bf16 %v257_v7, %v255_v6  ;;  %v319_v10 = vld [vmem:[%s1503_s12 + $0x200] sm:$0xff]  ;;  %v321_v11 = vld [vmem:[%s1503_s12 + $0x210] sm:$0xff]  ;;  %v260_v12 = vld [vmem:[%s1503_s12 + $0x28] sm:$0xff] }
  0x82   : > { %723 = vmatprep.subr.bf16.mxu1 %v722_v4  ;;  %v788_v13 = vpack.c.bf16 %v321_v11, %v319_v10  ;;  %v262_v14 = vld [vmem:[%s1503_s12 + $0x38] sm:$0xff]  ;;  %v324_v15 = vld [vmem:[%s1503_s12 + $0x228] sm:$0xff]  ;;  %v259_v19 = vld [vmem:[%s1503_s12 + $0x20] sm:$0xff] }
  0x83   : > { %v326_v16 = vld [vmem:[%s1503_s12 + $0x238] sm:$0xff]  ;;  %787 = vmatprep.subr.bf16.mxu0 %v786_v8  ;;  %725 = vmatpush1.bf16.msra.mxu1 %v724_v9  ;;  %v726_v17 = vpack.c.bf16 %v262_v14, %v260_v12  ;;  %v261_v20 = vld [vmem:[%s1503_s12 + $0x30] sm:$0xff]  ;;  %v323_v21 = vld [vmem:[%s1503_s12 + $0x220] sm:$0xff] }
  0x84   : > { %v790_v18 = vpack.c.bf16 %v326_v16, %v324_v15  ;;  %789 = vmatpush1.bf16.msra.mxu0 %v788_v13  ;;  %v728_v22 = vpack.c.bf16 %v261_v20, %v259_v19  ;;  %v325_v23 = vld [vmem:[%s1503_s12 + $0x230] sm:$0xff]  ;;  %v264_v24 = vld [vmem:[%s1503_s12 + $0x48] sm:$0xff]  ;;  %v266_v25 = vld [vmem:[%s1503_s12 + $0x58] sm:$0xff] }
  0x85   : > { %727 = vmatprep.subr.bf16.mxu1 %v726_v17  ;;  %v792_v26 = vpack.c.bf16 %v325_v23, %v323_v21  ;;  %v730_v27 = vpack.c.bf16 %v266_v25, %v264_v24  ;;  %v328_v28 = vld [vmem:[%s1503_s12 + $0x248] sm:$0xff]  ;;  %v330_v29 = vld [vmem:[%s1503_s12 + $0x258] sm:$0xff]  ;;  %v263_v30 = vld [vmem:[%s1503_s12 + $0x40] sm:$0xff] }
  0x86   : > { %791 = vmatprep.subr.bf16.mxu0 %v790_v18  ;;  %v794_v31 = vpack.c.bf16 %v330_v29, %v328_v28  ;;  %v265_v32 = vld [vmem:[%s1503_s12 + $0x50] sm:$0xff]  ;;  %v327_v33 = vld [vmem:[%s1503_s12 + $0x240] sm:$0xff]  ;;  %v268_v36 = vld [vmem:[%s1503_s12 + $0x68] sm:$0xff] }
  0x87   : > { %v329_v34 = vld [vmem:[%s1503_s12 + $0x250] sm:$0xff]  ;;  %729 = vmatpush1.bf16.msra.mxu1 %v728_v22  ;;  %v732_v35 = vpack.c.bf16 %v265_v32, %v263_v30  ;;  %v270_v37 = vld [vmem:[%s1503_s12 + $0x78] sm:$0xff]  ;;  %v332_v38 = vld [vmem:[%s1503_s12 + $0x268] sm:$0xff] }
  0x88   : > { %793 = vmatpush1.bf16.msra.mxu0 %v792_v26  ;;  %731 = vmatprep.subr.bf16.mxu1 %v730_v27  ;;  %v796_v39 = vpack.c.bf16 %v329_v34, %v327_v33  ;;  %v734_v40 = vpack.c.bf16 %v270_v37, %v268_v36  ;;  %v334_v41 = vld [vmem:[%s1503_s12 + $0x278] sm:$0xff]  ;;  %v267_v42 = vld [vmem:[%s1503_s12 + $0x60] sm:$0xff]  ;;  %v269_v43 = vld [vmem:[%s1503_s12 + $0x70] sm:$0xff] }
  0x89   : > { %795 = vmatprep.subr.bf16.mxu0 %v794_v31  ;;  %v798_v44 = vpack.c.bf16 %v334_v41, %v332_v38  ;;  %v331_v45 = vld [vmem:[%s1503_s12 + $0x260] sm:$0xff]  ;;  %v333_v46 = vld [vmem:[%s1503_s12 + $0x270] sm:$0xff]  ;;  %v272_v47 = vld [vmem:[%s1503_s12 + $0x88] sm:$0xff]  ;;  %v736_v51 = vpack.c.bf16 %v269_v43, %v267_v42 }
  0x8a   : > { %v274_v48 = vld [vmem:[%s1503_s12 + $0x98] sm:$0xff]  ;;  %v336_v49 = vld [vmem:[%s1503_s12 + $0x288] sm:$0xff]  ;;  %v800_v52 = vpack.c.bf16 %v333_v46, %v331_v45  ;;  %v271_v54 = vld [vmem:[%s1503_s12 + $0x80] sm:$0xff] }
  0x8b   : > { %v338_v50 = vld [vmem:[%s1503_s12 + $0x298] sm:$0xff]  ;;  %733 = vmatpush1.bf16.msra.mxu1 %v732_v35  ;;  %v738_v53 = vpack.c.bf16 %v274_v48, %v272_v47  ;;  %v273_v55 = vld [vmem:[%s1503_s12 + $0x90] sm:$0xff]  ;;  %v335_v56 = vld [vmem:[%s1503_s12 + $0x280] sm:$0xff] }
  0x8c   : > { %797 = vmatpush1.bf16.msra.mxu0 %v796_v39  ;;  %735 = vmatprep.subr.bf16.mxu1 %v734_v40  ;;  %v802_v57 = vpack.c.bf16 %v338_v50, %v336_v49  ;;  %v337_v58 = vld [vmem:[%s1503_s12 + $0x290] sm:$0xff]  ;;  %v276_v59 = vld [vmem:[%s1503_s12 + $0xa8] sm:$0xff]  ;;  %v278_v60 = vld [vmem:[%s1503_s12 + $0xb8] sm:$0xff]  ;;  %v740_v63 = vpack.c.bf16 %v273_v55, %v271_v54 }
  0x8d   : > { %799 = vmatprep.subr.bf16.mxu0 %v798_v44  ;;  %v340_v61 = vld [vmem:[%s1503_s12 + $0x2a8] sm:$0xff]  ;;  %v342_v62 = vld [vmem:[%s1503_s12 + $0x2b8] sm:$0xff]  ;;  %v804_v0 = vpack.c.bf16 %v337_v58, %v335_v56  ;;  %v742_v1 = vpack.c.bf16 %v278_v60, %v276_v59  ;;  %v275_v2 = vld [vmem:[%s1503_s12 + $0xa0] sm:$0xff] }
  0x8e   : > { %v277_v3 = vld [vmem:[%s1503_s12 + $0xb0] sm:$0xff]  ;;  %v339_v4 = vld [vmem:[%s1503_s12 + $0x2a0] sm:$0xff]  ;;  %v806_v5 = vpack.c.bf16 %v342_v62, %v340_v61  ;;  %v280_v7 = vld [vmem:[%s1503_s12 + $0xc8] sm:$0xff] }
  0x8f   : > { %737 = vmatpush1.bf16.msra.mxu1 %v736_v51  ;;  %v341_v6 = vld [vmem:[%s1503_s12 + $0x2b0] sm:$0xff]  ;;  %v282_v8 = vld [vmem:[%s1503_s12 + $0xd8] sm:$0xff]  ;;  %v344_v9 = vld [vmem:[%s1503_s12 + $0x2c8] sm:$0xff]  ;;  %v744_v11 = vpack.c.bf16 %v277_v3, %v275_v2 }
  0x90   : > { %801 = vmatpush1.bf16.msra.mxu0 %v800_v52  ;;  %739 = vmatprep.subr.bf16.mxu1 %v738_v53  ;;  %v346_v10 = vld [vmem:[%s1503_s12 + $0x2d8] sm:$0xff]  ;;  %v808_v12 = vpack.c.bf16 %v341_v6, %v339_v4  ;;  %v746_v13 = vpack.c.bf16 %v282_v8, %v280_v7  ;;  %v279_v14 = vld [vmem:[%s1503_s12 + $0xc0] sm:$0xff]  ;;  %v281_v15 = vld [vmem:[%s1503_s12 + $0xd0] sm:$0xff] }
  0x91   : > { %803 = vmatprep.subr.bf16.mxu0 %v802_v57  ;;  %v343_v16 = vld [vmem:[%s1503_s12 + $0x2c0] sm:$0xff]  ;;  %v810_v17 = vpack.c.bf16 %v346_v10, %v344_v9  ;;  %v345_v18 = vld [vmem:[%s1503_s12 + $0x2d0] sm:$0xff]  ;;  %v284_v19 = vld [vmem:[%s1503_s12 + $0xe8] sm:$0xff]  ;;  %v748_v23 = vpack.c.bf16 %v281_v15, %v279_v14 }
  0x92   : > { %v286_v20 = vld [vmem:[%s1503_s12 + $0xf8] sm:$0xff]  ;;  %v348_v21 = vld [vmem:[%s1503_s12 + $0x2e8] sm:$0xff]  ;;  %v812_v24 = vpack.c.bf16 %v345_v18, %v343_v16  ;;  %v283_v26 = vld [vmem:[%s1503_s12 + $0xe0] sm:$0xff] }
  0x93   : > { %741 = vmatpush1.bf16.msra.mxu1 %v740_v63  ;;  %v350_v22 = vld [vmem:[%s1503_s12 + $0x2f8] sm:$0xff]  ;;  %v750_v25 = vpack.c.bf16 %v286_v20, %v284_v19  ;;  %v285_v27 = vld [vmem:[%s1503_s12 + $0xf0] sm:$0xff]  ;;  %v347_v28 = vld [vmem:[%s1503_s12 + $0x2e0] sm:$0xff] }
  0x94   : > { %805 = vmatpush1.bf16.msra.mxu0 %v804_v0  ;;  %743 = vmatprep.subr.bf16.mxu1 %v742_v1  ;;  %v814_v29 = vpack.c.bf16 %v350_v22, %v348_v21  ;;  %v349_v30 = vld [vmem:[%s1503_s12 + $0x2f0] sm:$0xff]  ;;  %v288_v31 = vld [vmem:[%s1503_s12 + $0x108] sm:$0xff]  ;;  %v290_v32 = vld [vmem:[%s1503_s12 + $0x118] sm:$0xff]  ;;  %v752_v35 = vpack.c.bf16 %v285_v27, %v283_v26 }
  0x95   : > { %807 = vmatprep.subr.bf16.mxu0 %v806_v5  ;;  %v352_v33 = vld [vmem:[%s1503_s12 + $0x308] sm:$0xff]  ;;  %v354_v34 = vld [vmem:[%s1503_s12 + $0x318] sm:$0xff]  ;;  %v816_v36 = vpack.c.bf16 %v349_v30, %v347_v28  ;;  %v754_v37 = vpack.c.bf16 %v290_v32, %v288_v31  ;;  %v287_v38 = vld [vmem:[%s1503_s12 + $0x100] sm:$0xff] }
  0x96   : > { %v289_v39 = vld [vmem:[%s1503_s12 + $0x110] sm:$0xff]  ;;  %v351_v40 = vld [vmem:[%s1503_s12 + $0x300] sm:$0xff]  ;;  %v818_v41 = vpack.c.bf16 %v354_v34, %v352_v33  ;;  %v292_v43 = vld [vmem:[%s1503_s12 + $0x128] sm:$0xff] }
  0x97   : > { %745 = vmatpush1.bf16.msra.mxu1 %v744_v11  ;;  %v353_v42 = vld [vmem:[%s1503_s12 + $0x310] sm:$0xff]  ;;  %v294_v44 = vld [vmem:[%s1503_s12 + $0x138] sm:$0xff]  ;;  %v356_v45 = vld [vmem:[%s1503_s12 + $0x328] sm:$0xff]  ;;  %v756_v47 = vpack.c.bf16 %v289_v39, %v287_v38 }
  0x98   : > { %809 = vmatpush1.bf16.msra.mxu0 %v808_v12  ;;  %747 = vmatprep.subr.bf16.mxu1 %v746_v13  ;;  %v358_v46 = vld [vmem:[%s1503_s12 + $0x338] sm:$0xff]  ;;  %v820_v48 = vpack.c.bf16 %v353_v42, %v351_v40  ;;  %v758_v49 = vpack.c.bf16 %v294_v44, %v292_v43  ;;  %v291_v50 = vld [vmem:[%s1503_s12 + $0x120] sm:$0xff]  ;;  %v293_v51 = vld [vmem:[%s1503_s12 + $0x130] sm:$0xff] }
  0x99   : > { %811 = vmatprep.subr.bf16.mxu0 %v810_v17  ;;  %v355_v52 = vld [vmem:[%s1503_s12 + $0x320] sm:$0xff]  ;;  %v822_v53 = vpack.c.bf16 %v358_v46, %v356_v45  ;;  %v357_v54 = vld [vmem:[%s1503_s12 + $0x330] sm:$0xff]  ;;  %v296_v55 = vld [vmem:[%s1503_s12 + $0x148] sm:$0xff]  ;;  %v760_v59 = vpack.c.bf16 %v293_v51, %v291_v50 }
  0x9a   : > { %v298_v56 = vld [vmem:[%s1503_s12 + $0x158] sm:$0xff]  ;;  %v360_v57 = vld [vmem:[%s1503_s12 + $0x348] sm:$0xff]  ;;  %v824_v60 = vpack.c.bf16 %v357_v54, %v355_v52  ;;  %v295_v62 = vld [vmem:[%s1503_s12 + $0x140] sm:$0xff] }
  0x9b   : > { %749 = vmatpush1.bf16.msra.mxu1 %v748_v23  ;;  %v362_v58 = vld [vmem:[%s1503_s12 + $0x358] sm:$0xff]  ;;  %v762_v61 = vpack.c.bf16 %v298_v56, %v296_v55  ;;  %v297_v63 = vld [vmem:[%s1503_s12 + $0x150] sm:$0xff]  ;;  %v359_v0 = vld [vmem:[%s1503_s12 + $0x340] sm:$0xff] }
  0x9c   : > { %813 = vmatpush1.bf16.msra.mxu0 %v812_v24  ;;  %751 = vmatprep.subr.bf16.mxu1 %v750_v25  ;;  %v826_v1 = vpack.c.bf16 %v362_v58, %v360_v57  ;;  %v361_v2 = vld [vmem:[%s1503_s12 + $0x350] sm:$0xff]  ;;  %v300_v3 = vld [vmem:[%s1503_s12 + $0x168] sm:$0xff]  ;;  %v302_v4 = vld [vmem:[%s1503_s12 + $0x178] sm:$0xff]  ;;  %v764_v7 = vpack.c.bf16 %v297_v63, %v295_v62 }
  0x9d   : > { %815 = vmatprep.subr.bf16.mxu0 %v814_v29  ;;  %v364_v5 = vld [vmem:[%s1503_s12 + $0x368] sm:$0xff]  ;;  %v366_v6 = vld [vmem:[%s1503_s12 + $0x378] sm:$0xff]  ;;  %v299_v8 = vld [vmem:[%s1503_s12 + $0x160] sm:$0xff]  ;;  %v828_v9 = vpack.c.bf16 %v361_v2, %v359_v0  ;;  %v766_v10 = vpack.c.bf16 %v302_v4, %v300_v3 }
  0x9e   : > { %v301_v11 = vld [vmem:[%s1503_s12 + $0x170] sm:$0xff]  ;;  %v363_v12 = vld [vmem:[%s1503_s12 + $0x360] sm:$0xff]  ;;  %v830_v14 = vpack.c.bf16 %v366_v6, %v364_v5  ;;  %v304_v15 = vld [vmem:[%s1503_s12 + $0x188] sm:$0xff] }
  0x9f   : > { %753 = vmatpush1.bf16.msra.mxu1 %v752_v35  ;;  %v365_v13 = vld [vmem:[%s1503_s12 + $0x370] sm:$0xff]  ;;  %v306_v16 = vld [vmem:[%s1503_s12 + $0x198] sm:$0xff]  ;;  %v248_v17 = vld [vmem:[%s1496_s2 + $0x8] sm:$0xff]  ;;  %v768_v21 = vpack.c.bf16 %v301_v11, %v299_v8 }
  0xa0   : > { %817 = vmatpush1.bf16.msra.mxu0 %v816_v36  ;;  %755 = vmatprep.subr.bf16.mxu1 %v754_v37  ;;  %v368_v18 = vld [vmem:[%s1503_s12 + $0x388] sm:$0xff]  ;;  %v370_v19 = vld [vmem:[%s1503_s12 + $0x398] sm:$0xff]  ;;  %v832_v22 = vpack.c.bf16 %v365_v13, %v363_v12  ;;  %v770_v23 = vpack.c.bf16 %v306_v16, %v304_v15  ;;  %v303_v24 = vld [vmem:[%s1503_s12 + $0x180] sm:$0xff] }
  0xa1   : > { %819 = vmatprep.subr.bf16.mxu0 %v818_v41  ;;  %451 = vmatprep.mubr.f32.mxu1 %v248_v17  ;;  %v250_v20 = vld [vmem:[%s1496_s2 + $0x18] sm:$0xff]  ;;  %v305_v25 = vld [vmem:[%s1503_s12 + $0x190] sm:$0xff]  ;;  %v367_v26 = vld [vmem:[%s1503_s12 + $0x380] sm:$0xff]  ;;  %v834_v27 = vpack.c.bf16 %v370_v19, %v368_v18 }
  0xa2   : > { %528 = vmatprep.mubr.f32.mxu0 %v250_v20  ;;  %v369_v28 = vld [vmem:[%s1503_s12 + $0x390] sm:$0xff]  ;;  %v308_v29 = vld [vmem:[%s1503_s12 + $0x1a8] sm:$0xff]  ;;  %v310_v30 = vld [vmem:[%s1503_s12 + $0x1b8] sm:$0xff]  ;;  %v772_v33 = vpack.c.bf16 %v305_v25, %v303_v24 }
  0xa3   : > { %757 = vmatpush1.bf16.msra.mxu1 %v756_v47  ;;  %v372_v31 = vld [vmem:[%s1503_s12 + $0x3a8] sm:$0xff]  ;;  %v374_v32 = vld [vmem:[%s1503_s12 + $0x3b8] sm:$0xff]  ;;  %v836_v34 = vpack.c.bf16 %v369_v28, %v367_v26  ;;  %v774_v35 = vpack.c.bf16 %v310_v30, %v308_v29  ;;  %v307_v36 = vld [vmem:[%s1503_s12 + $0x1a0] sm:$0xff] }
  0xa4   : > { %821 = vmatpush1.bf16.msra.mxu0 %v820_v48  ;;  %759 = vmatprep.subr.bf16.mxu1 %v758_v49  ;;  %v309_v37 = vld [vmem:[%s1503_s12 + $0x1b0] sm:$0xff]  ;;  %v371_v38 = vld [vmem:[%s1503_s12 + $0x3a0] sm:$0xff]  ;;  %v838_v39 = vpack.c.bf16 %v374_v32, %v372_v31  ;;  %v312_v41 = vld [vmem:[%s1503_s12 + $0x1c8] sm:$0xff] }
  0xa5   : > { %823 = vmatprep.subr.bf16.mxu0 %v822_v53  ;;  %v373_v40 = vld [vmem:[%s1503_s12 + $0x3b0] sm:$0xff]  ;;  %v314_v42 = vld [vmem:[%s1503_s12 + $0x1d8] sm:$0xff]  ;;  %v376_v43 = vld [vmem:[%s1503_s12 + $0x3c8] sm:$0xff]  ;;  %v776_v45 = vpack.c.bf16 %v309_v37, %v307_v36 }
  0xa6   : > { %v378_v44 = vld [vmem:[%s1503_s12 + $0x3d8] sm:$0xff]  ;;  %v840_v46 = vpack.c.bf16 %v373_v40, %v371_v38  ;;  %v778_v47 = vpack.c.bf16 %v314_v42, %v312_v41  ;;  %v311_v48 = vld [vmem:[%s1503_s12 + $0x1c0] sm:$0xff]  ;;  %v313_v49 = vld [vmem:[%s1503_s12 + $0x1d0] sm:$0xff] }
  0xa7   : > { %761 = vmatpush1.bf16.msra.mxu1 %v760_v59  ;;  %v375_v50 = vld [vmem:[%s1503_s12 + $0x3c0] sm:$0xff]  ;;  %v842_v51 = vpack.c.bf16 %v378_v44, %v376_v43  ;;  %v377_v52 = vld [vmem:[%s1503_s12 + $0x3d0] sm:$0xff]  ;;  %v316_v53 = vld [vmem:[%s1503_s12 + $0x1e8] sm:$0xff]  ;;  %v780_v57 = vpack.c.bf16 %v313_v49, %v311_v48 }
  0xa8   : > { %825 = vmatpush1.bf16.msra.mxu0 %v824_v60  ;;  %763 = vmatprep.subr.bf16.mxu1 %v762_v61  ;;  %v318_v54 = vld [vmem:[%s1503_s12 + $0x1f8] sm:$0xff]  ;;  %v380_v55 = vld [vmem:[%s1503_s12 + $0x3e8] sm:$0xff]  ;;  %v844_v58 = vpack.c.bf16 %v377_v52, %v375_v50  ;;  %v315_v60 = vld [vmem:[%s1503_s12 + $0x1e0] sm:$0xff] }
  0xa9   : > { %827 = vmatprep.subr.bf16.mxu0 %v826_v1  ;;  %v382_v56 = vld [vmem:[%s1503_s12 + $0x3f8] sm:$0xff]  ;;  %v782_v59 = vpack.c.bf16 %v318_v54, %v316_v53  ;;  %v317_v61 = vld [vmem:[%s1503_s12 + $0x1f0] sm:$0xff]  ;;  %v379_v63 = vld [vmem:[%s1503_s12 + $0x3e0] sm:$0xff] }
  0xaa   : > { %v846_v62 = vpack.c.bf16 %v382_v56, %v380_v55  ;;  %v381_v0 = vld [vmem:[%s1503_s12 + $0x3f0] sm:$0xff]  ;;  %v784_v1 = vpack.c.bf16 %v317_v61, %v315_v60  ;;  %v247_v3 = vld [vmem:[%s1496_s2] sm:$0xff]  ;;  %v252_v5 = vld [vmem:[%s1496_s2 + $0x28] sm:$0xff] }
  0xab   : > { %765 = vmatpush1.bf16.msra.mxu1 %v764_v7  ;;  %v848_v2 = vpack.c.bf16 %v381_v0, %v379_v63  ;;  %v249_v4 = vld [vmem:[%s1496_s2 + $0x10] sm:$0xff]  ;;  %v254_v6 = vld [vmem:[%s1496_s2 + $0x38] sm:$0xff]  ;;  %v251_v7 = vld [vmem:[%s1496_s2 + $0x20] sm:$0xff] }
  0xac   : > { %829 = vmatpush1.bf16.msra.mxu0 %v828_v9  ;;  %767 = vmatprep.subr.bf16.mxu1 %v766_v10  ;;  %v253_v8 = vld [vmem:[%s1496_s2 + $0x30] sm:$0xff]  ;;  %v383_v10 = vld [vmem:[#allocation2] sm:$0xff]  ;;  %v386_v24 = vld [vmem:[#allocation2 + $0x18] sm:$0xff] }
  0xad   : > { %831 = vmatprep.subr.bf16.mxu0 %v830_v14  ;;  %v384_v14 = vld [vmem:[#allocation2 + $0x8] sm:$0xff]  ;;  %v385_v20 = vld [vmem:[#allocation2 + $0x10] sm:$0xff] }
  0xaf   : > { %769 = vmatpush1.bf16.msra.mxu1 %v768_v21 }
  0xb0   : > { %833 = vmatpush1.bf16.msra.mxu0 %v832_v22  ;;  %771 = vmatprep.subr.bf16.mxu1 %v770_v23 }
  0xb1   : > { %835 = vmatprep.subr.bf16.mxu0 %v834_v27 }
  0xb3   : > { %773 = vmatpush1.bf16.msra.mxu1 %v772_v33 }
  0xb4   : > { %837 = vmatpush1.bf16.msra.mxu0 %v836_v34  ;;  %775 = vmatprep.subr.bf16.mxu1 %v774_v35 }
  0xb5   : > { %839 = vmatprep.subr.bf16.mxu0 %v838_v39 }
  0xb7   : > { %777 = vmatpush1.bf16.msra.mxu1 %v776_v45 }
  0xb8   : > { %841 = vmatpush1.bf16.msra.mxu0 %v840_v46  ;;  %779 = vmatprep.subr.bf16.mxu1 %v778_v47 }
  0xb9   : > { %843 = vmatprep.subr.bf16.mxu0 %v842_v51 }
  0xbb   : > { %781 = vmatpush1.bf16.msra.mxu1 %v780_v57 }
  0xbc   : > { %845 = vmatpush1.bf16.msra.mxu0 %v844_v58  ;;  %783 = vmatprep.subr.bf16.mxu1 %v782_v59 }
  0xbd   : > { %847 = vmatprep.subr.bf16.mxu0 %v846_v62 }
  0xbf   : > { %785 = vmatpush1.bf16.msra.mxu1 %v784_v1 }
  0xc0   : > { %849 = vmatpush1.bf16.msra.mxu0 %v848_v2 }
  0xc2   : > { %452 = vmatmul.mubr.f32.vlgmr.msra.gmra.mrb[0].mxu1 %v247_v3 }
  0xc3   : > { %529 = vmatmul.mubr.f32.vlgmr.msra.gmra.mrb[0].mxu0 %v249_v4  ;;  %457 = vmatprep.mubr.f32.mxu1 %v252_v5 }
  0xc4   : > { %534 = vmatprep.mubr.f32.mxu0 %v254_v6 }
  0xc6   : > { %458 = vmatmul.mubr.f32.gmra.mrb[2].mxu1 %v251_v7 }
  0xc7   : > { %535 = vmatmul.mubr.f32.gmra.mrb[2].mxu0 %v253_v8 }
 0x195   : > { %v453_v9 = vpop.f32.mrb[0].mxu1 }
 0x196   : > { %v530_v11 = vpop.f32.mrb[0].mxu0  ;;  %v455_v12 = vpop.f32.mrb[1].mxu1 }
 0x197   : > { %v531_v13 = vadd.f32 %v530_v11, %v453_v9  ;;  %v532_v15 = vpop.f32.mrb[1].mxu0 }
 0x198   : > { %v533_v16 = vadd.f32 %v532_v15, %v455_v12 }
 0x199   : > { %v541_v17 = vadd.f32 %v531_v13, %v383_v10  ;;  %v459_v18 = vpop.f32.mrb[2].mxu1 }
 0x19a   : > { %v542_v19 = vadd.f32 %v533_v16, %v384_v14  ;;  %v536_v21 = vpop.f32.mrb[2].mxu0  ;;  %v461_v22 = vpop.f32.mrb[3].mxu1  ;;  %552 = sbr.rel (%p714_p10) target bundleno = 425 (0x1a9), region = 44 }
 0x19b   : > { %545 = vst [vmem:[#allocation2] sm:$0xff] %v541_v17  ;;  %v537_v23 = vadd.f32 %v536_v21, %v459_v18  ;;  %v538_v25 = vpop.f32.mrb[3].mxu0 }
 0x19c   : > { %546 = vst [vmem:[#allocation2 + $0x8] sm:$0xff] %v542_v19  ;;  %v539_v26 = vadd.f32 %v538_v25, %v461_v22 }
 0x19d   : > { %v543_v27 = vadd.f32 %v537_v23, %v385_v20 }
 0x19e   : > { %v544_v28 = vadd.f32 %v539_v26, %v386_v24 }
 0x19f   : > { %547 = vst [vmem:[#allocation2 + $0x10] sm:$0xff] %v543_v27 }
 0x1a0   : > { %548 = vst [vmem:[#allocation2 + $0x18] sm:$0xff] %v544_v28 }
 0x1a2   : > { %v553_v29 = vld [vmem:[#allocation2] sm:$0xff] }
 0x1a3   : > { %v554_v30 = vld [vmem:[#allocation2 + $0x8] sm:$0xff]  ;;  %557 = vst [vmem:[%s1512_s8] sm:$0xff] %v553_v29 }
 0x1a4   : > { %558 = vst [vmem:[%s1512_s8 + $0x8] sm:$0xff] %v554_v30 }
 0x1a6   : > { %v555_v31 = vld [vmem:[#allocation2 + $0x10] sm:$0xff] }
 0x1a7   : > { %559 = vst [vmem:[%s1512_s8 + $0x10] sm:$0xff] %v555_v31  ;;  %v556_v32 = vld [vmem:[#allocation2 + $0x18] sm:$0xff] }
 0x1a8   : > { %560 = vst [vmem:[%s1512_s8 + $0x18] sm:$0xff] %v556_v32 }
 0x1a9 PF: > { %s721_s3 = sshll.u32 %s1194_s19, 8  ;;  %s1782_s24 = sld [smem:[#allocation18_spill]] }
 0x1aa   : > { %s578_s17 = sshll.u32 %s1512_s8, 4  ;;  %s1667_s28 = scalar_lea.sflag [#allocation5], %s230_s5  ;;  %s1663_s17 = int_to_ptr.vmem [resolvable:$true] %s578_s17 }
 0x1ab   : > { %s1056_s15 = scalar_lea.vmem %s1663_s17, 512  ;;  %p1783_p11 = scmp.ne.s32.totalorder %s1775_s29, 0 }
 0x1ac   : > { %p1057_p1 = scmp.ne.s32.totalorder %s1663_s17, %s1056_s15  ;;  %s1217_s19 = smov [#allocation8]  }
 0x1ad   : > { %s1060_s23 = sshll.u32 %s1217_s19, 4  ;;  %s1061_s23 = int_to_ptr.vmem [resolvable:$false] %s1060_s23 }
 0x1ae   : > { %p1058_p3 = pnand %p1057_p1, %p1783_p11  ;;  %s1062_s2 = scalar_lea.vmem %s1061_s23, 1024 }
 0x1af   : > { %s1660_s6 = scalar_lea.hbm %s1782_s24, %s721_s3  ;;  %p1063_p12 = scmp.lt.s32.totalorder %s1663_s17, %s1061_s23 }
 0x1b0   : > { %p1059_p5 = pneg %p1058_p3  ;;  %p1064_p6 = scmp.lt.s32.totalorder %s1062_s2, %s1056_s15 }
 0x1b2   : > { %p1065_p0 = por %p1064_p6, %p1063_p12 }
 0x1b4   : > { %p1066_p4 = pnand %p1065_p0, %p1059_p5 }
 0x1b6   : > { %1069 = shalt.err (!%p1066_p4)
}
 0x1b7   : > { %s1070_s25 = scalar_lea.hbm %s1660_s6, 512  ;;  %s1074_s12 = scalar_lea.hbm %s1782_s24, 1536 }
 0x1b8   : > { %p1071_p9 = scmp.ne.s32.totalorder %s1660_s6, %s1070_s25  ;;  %p1075_p7 = scmp.lt.u32.totalorder %s1660_s6, %s1782_s24 }
 0x1b9   : > { %p1076_p8 = scmp.lt.u32.totalorder %s1074_s12, %s1070_s25  ;;  %p1078_p1 = scmp.lt.u32.totalorder %s1070_s25, %s1660_s6 }
 0x1ba   : > { %p1072_p2 = pnand %p1071_p9, %p1783_p11 }
 0x1bb   : > { %p1077_p10 = por %p1076_p8, %p1075_p7 }
 0x1bc   : > { %p1073_p13 = pneg %p1072_p2 }
 0x1bd   : > { %p1079_p3 = por %p1078_p1, %p1077_p10 }
 0x1bf   : > { %p1080_p5 = pnand %p1079_p3, %p1073_p13 }
 0x1c1   : > { %1083 = shalt.err (!%p1080_p5)
}
 0x1c2   : > { %s1218_s8 = smov 256   ;;  %s1219_s3 = smov 768  }
 0x1c3   : > { %s1220_s18 = smov 16  }
 0x1c4   : > { %859 = dma.vmem_to_hbm [thread:$0]  (%p1783_p11), %s1663_s17, 512, %s1660_s6, %s1667_s28, %s1218_s8, %s1219_s3, %s1220_s18  }
 0x1c5 PF: > { %p873_p12 = scmp.ge.s32.totalorder %s1206_s22, 2  ;;  %s593_s4 = sand.u32 1, %s1154_s9  }
 0x1c6   : > { %p1784_p6 = scmp.ne.s32.totalorder %s1777_s27, 0  ;;  %s594_s15 = scalar_lea.sflag [#allocation5], %s593_s4 }
 0x1c8   : > { %p869_p0 = pnand %p873_p12, %p1784_p6 }
 0x1ca   : > { %1149 = dma.done.wait (!%p869_p0), %s594_s15, 512  }
 0x1cb   : > { %1151 = vsyncadd (!%p869_p0), %s594_s15, 4294966784  ;;  %s21_s22 = sadd.s32 1, %s1206_s22   ;;  %s1786_s29 = sld [smem:[#allocation16_spill]] }
 0x1cc   : > { %p1696_p4 = scmp.ge.s32.totalorder %s21_s22, 8   ;;  %s1787_s6 = sld [smem:[#allocation12_spill]] }
 0x1cd   : > { %s1788_s17 = sld [smem:[#allocation14_spill]]  ;;  %s1789_s27 = sld [smem:[#allocation13_spill]] }
 0x1ce   : > { %s1790_s28 = sld [smem:[#allocation15_spill]]  ;;  %s1792_s9 = smov %s1158_s10 }
 0x1cf   : > { %s1793_s10 = smov %s1162_s11  ;;  %s1794_s11 = smov %s1438_s26 }
 0x1d0   : > { %s1795_s12 = smov %s1170_s13  ;;  %s1796_s13 = smov %s1174_s14 }
 0x1d1   : > { %s1797_s14 = smov %s1786_s29  ;;  %s1798_s15 = smov %s1182_s16 }
 0x1d2   : > { %s1799_s16 = smov %s1787_s6  ;;  %s1800_s18 = smov %s1198_s20 }
 0x1d3   : > { %s1801_s19 = smov %s1202_s21  ;;  %s1802_s20 = smov %s1789_s27 }
 0x1d4   : > { %s1803_s21 = smov %s1790_s28  ;;  %20 = sbr.rel (!%p1696_p4) target bundleno = 15 (0xf), region = 94 }
 0x1db   :  { %599 = vsyncpa [#allocation4], 1 }
 0x1dc   :  { %601 = vsyncpa [#allocation4 + $0x1], 1 }
 0x1dd   :  { %602 = vsyncpa [#allocation7], 1 }
 0x1de   :  { %604 = vsyncpa [#allocation7 + $0x1], 1 }
 0x1df   :  { %605 = vsyncpa [#allocation5], 1 }
 0x1e0   :  { %607 = vsyncpa [#allocation5 + $0x1], 1 }

</bundles_post_ra>
